<compile_context>
chip_gen: v7x
topology: tpu7x:2x2x1
jax: 0.10.0
libtpu: 0.0.40
codegen_flags: <defaults>
</compile_context>

<pallas_src>
import functools
import math

import jax
import jax.numpy as jnp
from jax.experimental import pallas as pl
from jax.experimental.pallas import tpu as pltpu


def _sin_cos_octaves(x, num_freqs, anchor_every):
    """Yield (k, sin(2^k*pi*x), cos(2^k*pi*x)) for k in [0, num_freqs).

    Exact sin/cos at k == 0 and every `anchor_every`-th octave; double-angle
    recurrence (VPU only) in between.  anchor_every=1 -> fully exact,
    anchor_every=0/None -> pure recurrence.
    """
    s = c = None
    for k in range(num_freqs):
        if k == 0 or (anchor_every and k % anchor_every == 0):
            a = jnp.float32((2.0 ** k) * math.pi) * x
            s, c = jnp.sin(a), jnp.cos(a)                 # transcendental anchor
        else:
            s, c = 2.0 * s * c, 1.0 - 2.0 * (s * s)       # double angle, VPU only
        yield k, s, c


def _pe_freq_major_kernel(x_ref, o_ref, *, num_freqs, anchor_every):
    """x_ref: (tr, C) tile of the flat input; o_ref: (2l, tr, C) channel-major tile."""
    x = x_ref[...].astype(jnp.float32)
    for k, s, c in _sin_cos_octaves(x, num_freqs, anchor_every):
        o_ref[2 * k] = s.astype(o_ref.dtype)
        o_ref[2 * k + 1] = c.astype(o_ref.dtype)


def _pe_interleaved_kernel(x_ref, o_ref, *, num_freqs, anchor_every):
    """x_ref: (tm, tdc) tile of (M, D); o_ref: (tm, 2l, tdc) tile of (M, 2l, D)."""
    x = x_ref[...].astype(jnp.float32)
    for k, s, c in _sin_cos_octaves(x, num_freqs, anchor_every):
        o_ref[:, 2 * k, :] = s.astype(o_ref.dtype)
        o_ref[:, 2 * k + 1, :] = c.astype(o_ref.dtype)


def _row_tile(rows, bytes_per_row, vmem_buffer_budget):
    """Row-tile size: VMEM budgeted, multiple of 8, never larger than the array,
    and small enough for >= 4 grid steps when rows allow (v7x megacore + overlap)."""
    if rows <= 8:
        return rows
    tr = max(8, min(1024, (vmem_buffer_budget // bytes_per_row) // 8 * 8))
    tr = min(tr, rows // 8 * 8)                      # block never exceeds the array dim
    tr = min(tr, max(8, (rows // 4) // 8 * 8))       # >= 4 grid steps when possible
    return tr


def _cost_estimate(n, l, anchor_every, in_bytes, out_bytes):
    anchors = sum(1 for k in range(l)
                  if k == 0 or (anchor_every and k % anchor_every == 0))
    return pl.CostEstimate(
        flops=int(n) * (4 * l + 8),
        transcendentals=2 * int(n) * anchors,
        bytes_accessed=int(n) * in_bytes + 2 * l * int(n) * out_bytes,
    )


def positional_encoding(x, l, *, anchor_every=4, layout="reference",
                        vmem_buffer_budget=16 * 1024 * 1024):
    """Pallas implementation of PositionalEncoding(l).forward(x).

    layout="reference":        (..., D*2*l), channel order [sin(f0 x), cos(f0 x), ...],
                               f_k = 2^k * pi  (matches the PyTorch module exactly).
    layout="frequency_major":  (2*l, ..., D) with out[2k]=sin(f_k x), out[2k+1]=cos(f_k x);
                               zero extra HBM passes (for consumers that can permute weights).
    """
    assert l >= 1, "need at least one frequency band"
    assert layout in ("reference", "frequency_major")
    orig_shape = x.shape
    d = orig_shape[-1]
    n = x.size
    out_dtype = x.dtype if jnp.issubdtype(x.dtype, jnp.floating) else jnp.float32
    in_b = jnp.dtype(x.dtype).itemsize
    out_b = jnp.dtype(out_dtype).itemsize
    kernel_kwargs = dict(num_freqs=l, anchor_every=anchor_every)
    vmem_limit = dict(vmem_limit_bytes=32 * 1024 * 1024)

    if layout == "reference" and d % 128 == 0:
        # Lane-dense blocks written straight into the interleaved (M, 2l, D) layout:
        # the final reshape to (..., 2l*D) is free -> no wrapper transpose at all.
        m = n // d
        tdc = 512 if d % 512 == 0 else (256 if d % 256 == 0 else 128)
        tm = _row_tile(m, 2 * tdc * (in_b + 2 * l * out_b), vmem_buffer_budget)
        out = pl.pallas_call(
            functools.partial(_pe_interleaved_kernel, **kernel_kwargs),
            out_shape=jax.ShapeDtypeStruct((m, 2 * l, d), out_dtype),
            grid_spec=pltpu.PrefetchScalarGridSpec(
                num_scalar_prefetch=0,
                grid=(pl.cdiv(m, tm), d // tdc),
                in_specs=[pl.BlockSpec((tm, tdc), lambda i, j: (i, j))],
                out_specs=pl.BlockSpec((tm, 2 * l, tdc), lambda i, j: (i, 0, j))),
            compiler_params=pltpu.CompilerParams(
                dimension_semantics=("parallel", "parallel"), **vmem_limit),
            cost_estimate=_cost_estimate(n, l, anchor_every, in_b, out_b),
        )(x.reshape(m, d))
        return out.reshape(orig_shape[:-1] + (2 * l * d,))

    # General path: lane-dense compute on a flat (rows, C) view, channel-major output.
    if n % 512 == 0 and n >= 8 * 512:
        lane_width = 512
    elif n % 256 == 0 and n >= 8 * 256:
        lane_width = 256
    else:
        lane_width = 128
    n_pad = pl.cdiv(n, lane_width) * lane_width
    x_flat = x.reshape(-1)
    if n_pad != n:                       # pad only when the flat size is ragged
        x_flat = jnp.pad(x_flat, (0, n_pad - n))
    rows = n_pad // lane_width
    tr = _row_tile(rows, 2 * lane_width * (in_b + 2 * l * out_b), vmem_buffer_budget)

    out3 = pl.pallas_call(
        functools.partial(_pe_freq_major_kernel, **kernel_kwargs),
        out_shape=jax.ShapeDtypeStruct((2 * l, rows, lane_width), out_dtype),
        grid_spec=pltpu.PrefetchScalarGridSpec(
            num_scalar_prefetch=0,
            grid=(pl.cdiv(rows, tr),),   # boundary block masked by Pallas; no row padding
            in_specs=[pl.BlockSpec((tr, lane_width), lambda i: (i, 0))],
            out_specs=pl.BlockSpec((2 * l, tr, lane_width), lambda i: (0, i, 0))),
        compiler_params=pltpu.CompilerParams(
            dimension_semantics=("parallel",), **vmem_limit),
        cost_estimate=_cost_estimate(n_pad, l, anchor_every, in_b, out_b),
    )(x_flat.reshape(rows, lane_width))

    y = out3.reshape(2 * l, n_pad)
    if n_pad != n:
        y = y[:, :n]
    if layout == "frequency_major":
        return y.reshape((2 * l,) + orig_shape)          # zero extra HBM passes
    # Reference layout: one XLA transpose (2l, M, D) -> (M, 2l, D), done in out_dtype.
    # TODO(synk): unavoidable for D not a multiple of 128 unless PE is fused into the
    # consumer matmul or the consumer adopts the frequency_major layout.
    m = n // d
    y = y.reshape(2 * l, m, d)
    y = jnp.transpose(y, (1, 0, 2))
    return y.reshape(orig_shape[:-1] + (2 * l * d,))


def positional_encoding_ref(x, l):
    """Pure-JAX reference mirroring the PyTorch module exactly."""
    out = []
    for k in range(l):
        f = (2.0 ** k) * jnp.pi
        out.append(jnp.sin(f * x))
        out.append(jnp.cos(f * x))
    return jnp.concatenate(out, axis=-1)


if __name__ == "__main__":
    key = jax.random.PRNGKey(0)
    k1, k2, k3 = jax.random.split(key, 3)

    # 1) Canonical small case (D=4, l=4): flat channel-major path, single-step grid.
    x1 = jax.random.normal(k1, (2, 64, 4), dtype=jnp.float32)
    y1 = jax.block_until_ready(positional_encoding(x1, 4))
    r1 = positional_encoding_ref(x1, 4)
    assert y1.shape == r1.shape, (y1.shape, r1.shape)
    assert jnp.allclose(y1, r1, atol=2e-5, rtol=1e-5), (
        "case1 max err " + str(float(jnp.max(jnp.abs(y1 - r1)))))

    # 2) Ragged size: lane padding, multi-step grid with a masked boundary block, and the
    #    hybrid exact-anchor + recurrence path (l=5 > anchor_every=4).
    x2 = jax.random.uniform(k2, (5, 300, 4), dtype=jnp.float32, minval=-1.0, maxval=1.0)
    y2 = jax.block_until_ready(positional_encoding(x2, 5))
    r2 = positional_encoding_ref(x2, 5)
    assert y2.shape == r2.shape, (y2.shape, r2.shape)
    assert jnp.allclose(y2, r2, atol=1e-4, rtol=1e-4), (
        "case2 max err " + str(float(jnp.max(jnp.abs(y2 - r2)))))

    # 3) D % 128 == 0: direct interleaved-layout path (no wrapper transpose at all).
    x3 = jax.random.normal(k3, (2, 3, 128), dtype=jnp.float32)
    y3 = jax.block_until_ready(positional_encoding(x3, 3))
    r3 = positional_encoding_ref(x3, 3)
    assert y3.shape == r3.shape, (y3.shape, r3.shape)
    assert jnp.allclose(y3, r3, atol=2e-5, rtol=1e-5), (
        "case3 max err " + str(float(jnp.max(jnp.abs(y3 - r3)))))

    print("KERNEL_OK")
</pallas_src>

<mosaic_0001>
module attributes {stable_mosaic.version = 11 : i64} {
  func.func @_pe_freq_major_kernel(%arg0: i32, %arg1: memref<4x128xf32, #tpu.memory_space<vmem>>, %arg2: memref<8x4x128xf32, #tpu.memory_space<vmem>>) attributes {dimension_semantics = [#tpu.dimension_semantics<parallel>], iteration_bounds = array<i64: 1>, scalar_prefetch = 0 : i64, scratch_operands = 0 : i64, tpu.core_type = #tpu.core_type<tc>, window_params = [{transform_indices = @transform_0, window_bounds = array<i64: 4, 128>}, {transform_indices = @transform_1, window_bounds = array<i64: 8, 4, 128>}]} {
    %c0 = arith.constant 0 : index
    %c0_0 = arith.constant 0 : index
    %0 = vector.load %arg1[%c0, %c0_0] : memref<4x128xf32, #tpu.memory_space<vmem>>, vector<4x128xf32>
    %cst = arith.constant 3.14159274 : f32
    %1 = vector.broadcast %cst : f32 to vector<4x128xf32>
    %2 = arith.mulf %1, %0 : vector<4x128xf32>
    %3 = math.sin %2 : vector<4x128xf32>
    %4 = math.cos %2 : vector<4x128xf32>
    %c0_1 = arith.constant 0 : index
    %c0_2 = arith.constant 0 : index
    %c0_3 = arith.constant 0 : index
    %5 = vector.load %arg2[%c0_1, %c0_2, %c0_3] : memref<8x4x128xf32, #tpu.memory_space<vmem>>, vector<1x4x128xf32>
    %6 = vector.shape_cast %5 : vector<1x4x128xf32> to vector<4x128xf32>
    %7 = vector.shape_cast %3 : vector<4x128xf32> to vector<1x4x128xf32>
    tpu.vector_store %arg2[%c0_1, %c0_2, %c0_3], %7 {strides = array<i32>} : memref<8x4x128xf32, #tpu.memory_space<vmem>>, vector<1x4x128xf32>,
    %c1 = arith.constant 1 : index
    %c0_4 = arith.constant 0 : index
    %c0_5 = arith.constant 0 : index
    %8 = vector.load %arg2[%c1, %c0_4, %c0_5] : memref<8x4x128xf32, #tpu.memory_space<vmem>>, vector<1x4x128xf32>
    %9 = vector.shape_cast %8 : vector<1x4x128xf32> to vector<4x128xf32>
    %10 = vector.shape_cast %4 : vector<4x128xf32> to vector<1x4x128xf32>
    tpu.vector_store %arg2[%c1, %c0_4, %c0_5], %10 {strides = array<i32>} : memref<8x4x128xf32, #tpu.memory_space<vmem>>, vector<1x4x128xf32>,
    %cst_6 = arith.constant 2.000000e+00 : f32
    %11 = vector.broadcast %cst_6 : f32 to vector<4x128xf32>
    %12 = arith.mulf %11, %3 : vector<4x128xf32>
    %13 = arith.mulf %12, %4 : vector<4x128xf32>
    %14 = arith.mulf %3, %3 : vector<4x128xf32>
    %cst_7 = arith.constant 2.000000e+00 : f32
    %15 = vector.broadcast %cst_7 : f32 to vector<4x128xf32>
    %16 = arith.mulf %15, %14 : vector<4x128xf32>
    %cst_8 = arith.constant 1.000000e+00 : f32
    %17 = vector.broadcast %cst_8 : f32 to vector<4x128xf32>
    %18 = arith.subf %17, %16 : vector<4x128xf32>
    %c2 = arith.constant 2 : index
    %c0_9 = arith.constant 0 : index
    %c0_10 = arith.constant 0 : index
    %19 = vector.load %arg2[%c2, %c0_9, %c0_10] : memref<8x4x128xf32, #tpu.memory_space<vmem>>, vector<1x4x128xf32>
    %20 = vector.shape_cast %19 : vector<1x4x128xf32> to vector<4x128xf32>
    %21 = vector.shape_cast %13 : vector<4x128xf32> to vector<1x4x128xf32>
    tpu.vector_store %arg2[%c2, %c0_9, %c0_10], %21 {strides = array<i32>} : memref<8x4x128xf32, #tpu.memory_space<vmem>>, vector<1x4x128xf32>,
    %c3 = arith.constant 3 : index
    %c0_11 = arith.constant 0 : index
    %c0_12 = arith.constant 0 : index
    %22 = vector.load %arg2[%c3, %c0_11, %c0_12] : memref<8x4x128xf32, #tpu.memory_space<vmem>>, vector<1x4x128xf32>
    %23 = vector.shape_cast %22 : vector<1x4x128xf32> to vector<4x128xf32>
    %24 = vector.shape_cast %18 : vector<4x128xf32> to vector<1x4x128xf32>
    tpu.vector_store %arg2[%c3, %c0_11, %c0_12], %24 {strides = array<i32>} : memref<8x4x128xf32, #tpu.memory_space<vmem>>, vector<1x4x128xf32>,
    %cst_13 = arith.constant 2.000000e+00 : f32
    %25 = vector.broadcast %cst_13 : f32 to vector<4x128xf32>
    %26 = arith.mulf %25, %13 : vector<4x128xf32>
    %27 = arith.mulf %26, %18 : vector<4x128xf32>
    %28 = arith.mulf %13, %13 : vector<4x128xf32>
    %cst_14 = arith.constant 2.000000e+00 : f32
    %29 = vector.broadcast %cst_14 : f32 to vector<4x128xf32>
    %30 = arith.mulf %29, %28 : vector<4x128xf32>
    %cst_15 = arith.constant 1.000000e+00 : f32
    %31 = vector.broadcast %cst_15 : f32 to vector<4x128xf32>
    %32 = arith.subf %31, %30 : vector<4x128xf32>
    %c4 = arith.constant 4 : index
    %c0_16 = arith.constant 0 : index
    %c0_17 = arith.constant 0 : index
    %33 = vector.load %arg2[%c4, %c0_16, %c0_17] : memref<8x4x128xf32, #tpu.memory_space<vmem>>, vector<1x4x128xf32>
    %34 = vector.shape_cast %33 : vector<1x4x128xf32> to vector<4x128xf32>
    %35 = vector.shape_cast %27 : vector<4x128xf32> to vector<1x4x128xf32>
    tpu.vector_store %arg2[%c4, %c0_16, %c0_17], %35 {strides = array<i32>} : memref<8x4x128xf32, #tpu.memory_space<vmem>>, vector<1x4x128xf32>,
    %c5 = arith.constant 5 : index
    %c0_18 = arith.constant 0 : index
    %c0_19 = arith.constant 0 : index
    %36 = vector.load %arg2[%c5, %c0_18, %c0_19] : memref<8x4x128xf32, #tpu.memory_space<vmem>>, vector<1x4x128xf32>
    %37 = vector.shape_cast %36 : vector<1x4x128xf32> to vector<4x128xf32>
    %38 = vector.shape_cast %32 : vector<4x128xf32> to vector<1x4x128xf32>
    tpu.vector_store %arg2[%c5, %c0_18, %c0_19], %38 {strides = array<i32>} : memref<8x4x128xf32, #tpu.memory_space<vmem>>, vector<1x4x128xf32>,
    %cst_20 = arith.constant 2.000000e+00 : f32
    %39 = vector.broadcast %cst_20 : f32 to vector<4x128xf32>
    %40 = arith.mulf %39, %27 : vector<4x128xf32>
    %41 = arith.mulf %40, %32 : vector<4x128xf32>
    %42 = arith.mulf %27, %27 : vector<4x128xf32>
    %cst_21 = arith.constant 2.000000e+00 : f32
    %43 = vector.broadcast %cst_21 : f32 to vector<4x128xf32>
    %44 = arith.mulf %43, %42 : vector<4x128xf32>
    %cst_22 = arith.constant 1.000000e+00 : f32
    %45 = vector.broadcast %cst_22 : f32 to vector<4x128xf32>
    %46 = arith.subf %45, %44 : vector<4x128xf32>
    %c6 = arith.constant 6 : index
    %c0_23 = arith.constant 0 : index
    %c0_24 = arith.constant 0 : index
    %47 = vector.load %arg2[%c6, %c0_23, %c0_24] : memref<8x4x128xf32, #tpu.memory_space<vmem>>, vector<1x4x128xf32>
    %48 = vector.shape_cast %47 : vector<1x4x128xf32> to vector<4x128xf32>
    %49 = vector.shape_cast %41 : vector<4x128xf32> to vector<1x4x128xf32>
    tpu.vector_store %arg2[%c6, %c0_23, %c0_24], %49 {strides = array<i32>} : memref<8x4x128xf32, #tpu.memory_space<vmem>>, vector<1x4x128xf32>,
    %c7 = arith.constant 7 : index
    %c0_25 = arith.constant 0 : index
    %c0_26 = arith.constant 0 : index
    %50 = vector.load %arg2[%c7, %c0_25, %c0_26] : memref<8x4x128xf32, #tpu.memory_space<vmem>>, vector<1x4x128xf32>
    %51 = vector.shape_cast %50 : vector<1x4x128xf32> to vector<4x128xf32>
    %52 = vector.shape_cast %46 : vector<4x128xf32> to vector<1x4x128xf32>
    tpu.vector_store %arg2[%c7, %c0_25, %c0_26], %52 {strides = array<i32>} : memref<8x4x128xf32, #tpu.memory_space<vmem>>, vector<1x4x128xf32>,
    return
  }
  func.func @transform_0(%arg0: i32) -> (i32, i32) {
    %c0_i32 = arith.constant 0 : i32
    %c0_i32_0 = arith.constant 0 : i32
    return %arg0, %c0_i32 : i32, i32
  }
  func.func @transform_1(%arg0: i32) -> (i32, i32, i32) {
    %c0_i32 = arith.constant 0 : i32
    %c0_i32_0 = arith.constant 0 : i32
    %c0_i32_1 = arith.constant 0 : i32
    return %c0_i32, %arg0, %c0_i32_0 : i32, i32, i32
  }
}

</mosaic_0001>

<bundles_post_ra>
// kernel: tpu_custom_call.1
= control target key start
LH: loop header
LB: loop body
LE: loop exit
PB: predicated region body
PF: predicated region fallthrough
CT: control target
= control target key end

     0   :  { %6 = vsyncpa [#allocation3], 0  ;;  %s416_s0 = inlined_call_operand.hbm [shape: f32[4,128], index: 0, kind: input, shape index: {}]   ;;  %s417_s1 = inlined_call_operand.hbm [shape: f32[8,4,128], index: 1, kind: output, shape index: {}]  }
   0x1   :  { %7 = vsyncpa [#allocation4], 0  ;;  %s351_s6 = smov [#allocation2]   ;;  %s303_s10 = scalar_lea.hbm %s416_s0, 64 }
   0x2   :  { %s14_s7 = sshll.u32 %s351_s6, 4  ;;  %p304_p0 = scmp.ne.s32.totalorder %s416_s0, %s303_s10  ;;  %s15_s7 = int_to_ptr.vmem [resolvable:$true] %s14_s7 }
   0x3   :  { %p307_p1 = scmp.lt.u32.totalorder %s303_s10, %s416_s0 }
   0x5   :  { %p309_p2 = pnand %p307_p1, %p304_p0 }
   0x7   :  { %312 = shalt.err (!%p309_p2)
}
   0x8   :  { %s313_s15 = scalar_lea.vmem %s15_s7, 64  ;;  %p318_p4 = scmp.lt.s32.totalorder %s15_s7, %s15_s7 }
   0x9   :  { %p314_p3 = scmp.ne.s32.totalorder %s15_s7, %s313_s15  ;;  %p319_p5 = scmp.lt.s32.totalorder %s313_s15, %s313_s15 }
   0xb   :  { %p320_p6 = por %p319_p5, %p318_p4 }
   0xd   :  { %p321_p7 = pnand %p320_p6, %p314_p3 }
   0xf   :  { %324 = shalt.err (!%p321_p7)
}
  0x10   :  { %17 = dma.hbm_to_vmem [thread:$0]  %s416_s0, 64, %s15_s7, [#allocation3]  }
  0x11   :  { %347 = dma.done.wait [#allocation3], 64  }
  0x12   :  { %348 = vsyncadd [#allocation3], 4294967232  ;;  %v21_v0 = vld [vmem:[#allocation2] sm:$0xf]  ;;  %v352_v13 = vmov 683565275  }
  0x13   :  { %v383_v1 = vmul.f32 3.1415927, %v21_v0  ;;  %v353_v15 = vmov 2475754826   ;;  %v354_v17 = vmov 2131351028  }
  0x14   :  { %v355_v19 = vmov 2102212464   ;;  %v356_v21 = vmov 920167782   ;;  %v357_v28 = vmov 1326507024  }
  0x15   :  { %v26_v2 = vand.u32 2139095040, %v383_v1  ;;  %v23_v4 = vand.u32 2147483647, %v383_v1  ;;  %vm25_vm7 = vcmp.lt.s32.totalorder %v383_v1, 0  ;;  %vm115_vm15 = vweird.f32 %v383_v1  ;;  %s358_s0 = smov [#allocation5]  }
  0x16   :  { %s265_s18 = sshll.u32 %s358_s0, 4  ;;  %s266_s18 = int_to_ptr.vmem [resolvable:$true] %s265_s18 }
  0x17   :  { %v27_v3 = vshrl.u32 %v26_v2, 23  ;;  %v30_v7 = vand.u32 8388607, %v23_v4  ;;  %vm24_vm8 = vcmp.le.f32.partialorder %v23_v4, 0.7853982  ;;  %s325_s19 = scalar_lea.vmem %s266_s18, 512  ;;  %p330_p9 = scmp.lt.s32.totalorder %s266_s18, %s266_s18 }
  0x18   :  { %p326_p8 = scmp.ne.s32.totalorder %s266_s18, %s325_s19  ;;  %p331_p10 = scmp.lt.s32.totalorder %s325_s19, %s325_s19 }
  0x19   :  { %v277_v5 = vadd.s32 4294967169, %v27_v3  ;;  %v31_v10 = vor.u32 8388608, %v30_v7 }
  0x1a   :  { %p332_p11 = por %p331_p10, %p330_p9 }
  0x1b   :  { %v33_v6 = vadd.s32 1, %v277_v5  ;;  %v71_v30 = vshll.u32 %v31_v10, 8 }
  0x1c   :  { %p333_p12 = pnand %p332_p11, %p326_p8 }
  0x1d   :  { %vm34_vm0 = vcmp.gt.s32.totalorder %v33_v6, 0 }
  0x1e   :  { %v35_v8 = vsel %vm34_vm0, %v33_v6, 0 }
  0x1f   :  { %v37_v9 = vand.u32 31, %v35_v8  ;;  %v36_v11 = vshrl.u32 %v35_v8, 5 }
  0x21   :  { %v38_v12 = vsub.s32 32, %v37_v9  ;;  %v40_v14 = vshll.u32 %v352_v13, %v37_v9  ;;  %v43_v16 = vshll.u32 %v353_v15, %v37_v9  ;;  %v46_v18 = vshll.u32 %v354_v17, %v37_v9 }
  0x22   :  { %v49_v20 = vshll.u32 %v355_v19, %v37_v9  ;;  %v52_v22 = vshll.u32 %v356_v21, %v37_v9  ;;  %vm55_vm1 = vcmp.lt.s32.totalorder %v36_v11, 1  ;;  %vm58_vm2 = vcmp.lt.s32.totalorder %v36_v11, 4 }
  0x23   :  { %v39_v23 = vshrl.u32 %v352_v13, %v38_v12  ;;  %v41_v24 = vshrl.u32 %v353_v15, %v38_v12  ;;  %v44_v25 = vshrl.u32 %v354_v17, %v38_v12  ;;  %v47_v26 = vshrl.u32 %v355_v19, %v38_v12 }
  0x24   :  { %v50_v27 = vshrl.u32 %v356_v21, %v38_v12  ;;  %v53_v29 = vshrl.u32 %v357_v28, %v38_v12  ;;  %vm56_vm3 = vcmp.lt.s32.totalorder %v36_v11, 2  ;;  %vm57_vm4 = vcmp.lt.s32.totalorder %v36_v11, 3 }
  0x25   :  { %v42_v31 = vor.u32 %v41_v24, %v40_v14  ;;  %v45_v32 = vor.u32 %v44_v25, %v43_v16  ;;  %v48_v33 = vor.u32 %v47_v26, %v46_v18 }
  0x26   :  { %v51_v34 = vor.u32 %v50_v27, %v49_v20  ;;  %v54_v35 = vor.u32 %v53_v29, %v52_v22 }
  0x27   :  { %v59_v36 = vsel %vm55_vm1, %v39_v23, %v42_v31  ;;  %v60_v37 = vsel %vm58_vm2, %v48_v33, 2102212464  ;;  %v63_v38 = vsel %vm55_vm1, %v42_v31, %v45_v32  ;;  %v67_v39 = vsel %vm55_vm1, %v45_v32, %v48_v33 }
  0x28   :  { %v61_v40 = vsel %vm57_vm4, %v45_v32, %v60_v37  ;;  %v64_v41 = vsel %vm58_vm2, %v51_v34, 920167782  ;;  %v68_v42 = vsel %vm58_vm2, %v54_v35, 1326507024 }
  0x29   :  { %v65_v43 = vsel %vm57_vm4, %v48_v33, %v64_v41  ;;  %v69_v44 = vsel %vm57_vm4, %v51_v34, %v68_v42  ;;  %v62_v45 = vsel %vm56_vm3, %v59_v36, %v61_v40 }
  0x2a   :  { %v66_v46 = vsel %vm56_vm3, %v63_v38, %v65_v43  ;;  %v70_v47 = vsel %vm56_vm3, %v67_v39, %v69_v44  ;;  %v78_v52 = vmul.u32 %v71_v30, %v62_v45 }
  0x2b   :  { %v389_v48 = vmul.u32.u64.low %v71_v30, %v70_v47  ;;  %v390_v49 = vmul.u32.u64.high %v71_v30, %v70_v47, %v389_v48  ;;  %v392_v50 = vmul.u32.u64.low %v71_v30, %v66_v46  ;;  %v393_v51 = vmul.u32.u64.high %v71_v30, %v66_v46, %v392_v50 }
  0x2d   :  { %vm80_vm5 = vc.u32 %v390_v49, %v392_v50  ;;  %v81_v53 = vadd.s32 1, %v393_v51  ;;  %v79_v0 = vadd.s32 %v392_v50, %v390_v49 }
  0x2f   :  { %v82_v54 = vsel %vm80_vm5, %v81_v53, %v393_v51 }
  0x30   :  { %v83_v55 = vadd.s32 %v82_v54, %v78_v52 }
  0x32   :  { %v84_v56 = vadd.s32 536870912, %v83_v55 }
  0x34   :  { %v85_v57 = vshrl.u32 %v84_v56, 30 }
  0x36   :  { %v86_v58 = vshll.u32 %v85_v57, 30  ;;  %v109_v14 = vsub.s32 4, %v85_v57 }
  0x38   :  { %v87_v59 = vsub.s32 %v83_v55, %v86_v58  ;;  %v110_v17 = vsel %vm25_vm7, %v109_v14, %v85_v57 }
  0x39   :  { %v112_v20 = vsel %vm24_vm8, 0, %v110_v17 }
  0x3a   :  { %v89_v60 = vsub.s32 0, %v87_v59  ;;  %v116_v21 = vadd.s32 3, %v112_v20  ;;  %v220_v23 = vand.u32 3, %v112_v20 }
  0x3c   :  { %v278_v61 = vmin.u32 %v89_v60, %v87_v59  ;;  %v117_v22 = vand.u32 3, %v116_v21  ;;  %vm225_vm10 = vcmp.eq.s32.totalorder %v220_v23, 2  ;;  %vm222_vm12 = vcmp.eq.s32.totalorder %v220_v23, 0 }
  0x3d   :  { %vm221_vm14 = vcmp.lt.s32.totalorder %v220_v23, 2 }
  0x3e   :  { %v91_v62 = vclz %v278_v61  ;;  %vm122_vm9 = vcmp.eq.s32.totalorder %v117_v22, 2  ;;  %vm119_vm11 = vcmp.eq.s32.totalorder %v117_v22, 0  ;;  %vm118_vm13 = vcmp.lt.s32.totalorder %v117_v22, 2 }
  0x40   :  { %v279_v63 = vadd.s32 4294967294, %v91_v62 }
  0x42   :  { %vm280_vm6 = vcmp.lt.s32.totalorder %v279_v63, 0 }
  0x43   :  { %v94_v2 = vsel %vm280_vm6, 0, %v279_v63 }
  0x44   :  { %v95_v3 = vsub.s32 32, %v94_v2  ;;  %v96_v5 = vshll.u32 %v87_v59, %v94_v2  ;;  %v99_v6 = vsub.s32 4294967266, %v94_v2 }
  0x46   :  { %v97_v7 = vshrl.u32 %v79_v0, %v95_v3  ;;  %v100_v8 = vadd.s32 127, %v99_v6 }
  0x48   :  { %v98_v9 = vor.u32 %v97_v7, %v96_v5  ;;  %v101_v10 = vshll.u32 %v100_v8, 23 }
  0x4a   :  { %v102_v11 = vor.u32 4788187, %v101_v10  ;;  %v105_v12 = vcvt.s32.f32 %v98_v9 }
  0x4c   :  { %v103_v13 = vand.u32 2147483647, %v102_v11 }
  0x4e   :  { %v106_v15 = vmul.f32 %v105_v12, %v103_v13 }
  0x50   :  { %v107_v16 = vxor.u32 2147483648, %v106_v15 }
  0x52   :  { %v108_v18 = vsel %vm25_vm7, %v107_v16, %v106_v15 }
  0x53   :  { %v111_v19 = vsel %vm24_vm8, %v383_v1, %v108_v18 }
  0x54   :  { %299 = vcosq.f32 %v111_v19 }
  0x55   :  { %301 = vsinq.f32 %v111_v19 }
  0x5e   :  { %v300_v24 = vpop.eup %299 }
  0x5f   :  { %v302_v25 = vpop.eup %301  ;;  %v123_v26 = vxor.u32 2147483648, %v300_v24 }
  0x60   :  { %v120_v4 = vxor.u32 2147483648, %v302_v25 }
  0x61   :  { %v124_v27 = vsel %vm122_vm9, %v123_v26, %v302_v25  ;;  %v227_v28 = vsel %vm225_vm10, %v123_v26, %v302_v25 }
  0x62   :  { %v121_v29 = vsel %vm119_vm11, %v300_v24, %v120_v4  ;;  %v224_v30 = vsel %vm222_vm12, %v300_v24, %v120_v4 }
  0x63   :  { %v125_v31 = vsel %vm118_vm13, %v121_v29, %v124_v27  ;;  %v228_v32 = vsel %vm221_vm14, %v224_v30, %v227_v28 }
  0x64   :  { %v126_v33 = vsel %vm115_vm15, nan, %v125_v31  ;;  %v229_v34 = vsel %vm115_vm15, nan, %v228_v32 }
  0x65   :  { %230 = vst [vmem:[#allocation5] sm:$0xf] %v126_v33  ;;  %232 = vst [vmem:[#allocation5 + $0x4] sm:$0xf] %v229_v34  ;;  %v233_v35 = vmul.f32 2.0, %v126_v33  ;;  %v235_v36 = vmul.f32 %v126_v33, %v126_v33 }
  0x67   :  { %v234_v37 = vmul.f32 %v233_v35, %v229_v34  ;;  %v236_v38 = vmul.f32 2.0, %v235_v36 }
  0x69   :  { %239 = vst [vmem:[#allocation5 + $0x8] sm:$0xf] %v234_v37  ;;  %v237_v39 = vsub.f32 1.0, %v236_v38  ;;  %v242_v40 = vmul.f32 2.0, %v234_v37  ;;  %v244_v41 = vmul.f32 %v234_v37, %v234_v37 }
  0x6b   :  { %241 = vst [vmem:[#allocation5 + $0xc] sm:$0xf] %v237_v39  ;;  %v243_v1 = vmul.f32 %v242_v40, %v237_v39  ;;  %v245_v42 = vmul.f32 2.0, %v244_v41 }
  0x6d   :  { %248 = vst [vmem:[#allocation5 + $0x10] sm:$0xf] %v243_v1  ;;  %v246_v43 = vsub.f32 1.0, %v245_v42  ;;  %v251_v44 = vmul.f32 2.0, %v243_v1  ;;  %v253_v45 = vmul.f32 %v243_v1, %v243_v1 }
  0x6f   :  { %250 = vst [vmem:[#allocation5 + $0x14] sm:$0xf] %v246_v43  ;;  %v252_v46 = vmul.f32 %v251_v44, %v246_v43  ;;  %v254_v47 = vmul.f32 2.0, %v253_v45 }
  0x71   :  { %257 = vst [vmem:[#allocation5 + $0x18] sm:$0xf] %v252_v46  ;;  %v255_v48 = vsub.f32 1.0, %v254_v47 }
  0x73   :  { %259 = vst [vmem:[#allocation5 + $0x1c] sm:$0xf] %v255_v48 }
  0x74   :  { %336 = shalt.err (!%p333_p12)
}
  0x75   :  { %s337_s22 = scalar_lea.hbm %s417_s1, 512 }
  0x76   :  { %p338_p13 = scmp.ne.s32.totalorder %s417_s1, %s337_s22  ;;  %p341_p0 = scmp.lt.u32.totalorder %s337_s22, %s417_s1 }
  0x78   :  { %p343_p1 = pnand %p341_p0, %p338_p13 }
  0x7a   :  { %346 = shalt.err (!%p343_p1)
}
  0x7b   :  { %s359_s27 = smov 64   ;;  %s360_s28 = smov 4  }
  0x7c   :  { %271 = dma.vmem_to_hbm [thread:$0]  %s266_s18, 512, %s417_s1, [#allocation4], %s359_s27, %s359_s27, %s360_s28  }
  0x7d   :  { %349 = dma.done.wait [#allocation4], 512  }
  0x7e   :  { %350 = vsyncadd [#allocation4], 4294966784 }
  0x7f   :  { %275 = vsyncpa [#allocation3], 1 }
  0x80   :  { %276 = vsyncpa [#allocation4], 1 }

</bundles_post_ra>
